<compile_context>
chip_gen: v5e
topology: v5e:2x2
jax: 0.10.0
libtpu: 0.0.40
codegen_flags: <defaults>
</compile_context>

<pallas_src>
import jax
import jax.numpy as jnp
from jax.experimental import pallas as pl
from jax.experimental.pallas import tpu as pltpu

IN_FEATURES = 300
OUT_FEATURES = 4
MAX_TILE_B = 8192                      # 2x12 MiB x-tiles + 2x4 MiB out-tiles ~= 32 MiB
MIN_GRID_STEPS = 4                     # several steps -> both v7x TCs get work
VMEM_LIMIT_BYTES = 48 * 1024 * 1024    # headroom under v7x's 64 MiB physical VMEM


def _linear_softmax_kernel(x_ref, w_ref, o_ref):
    # MXU matmul with f32 accumulation, then numerically-stable softmax.
    logits = jnp.dot(x_ref[...], w_ref[...], preferred_element_type=jnp.float32)
    m = jnp.max(logits, axis=-1, keepdims=True)
    e = jnp.exp(logits - m)
    denom = jnp.sum(e, axis=-1, keepdims=True)
    # Exact divide: row sums hit 1.0 to f32 precision; free (HBM-bound kernel).
    o_ref[...] = (e / denom).astype(o_ref.dtype)


def _choose_tile_b(B):
    """Batch tile: full array for tiny B, else a multiple of 8 giving >=~4 steps."""
    if B <= 8 * MIN_GRID_STEPS:
        return B                       # single block == full array (always legal)
    tb = -(-B // MIN_GRID_STEPS)       # ceil(B / MIN_GRID_STEPS)
    tb = ((tb + 7) // 8) * 8           # sublane multiple (required when tb < B)
    return min(MAX_TILE_B, tb)


def net_forward(x, w, tile_b=None):
    """x: [B, 300] f32, w: [300, 4] f32 -> softmax(x @ w, axis=-1): [B, 4]."""
    B = x.shape[0]
    tb = _choose_tile_b(B) if tile_b is None else tile_b
    grid_b = -(-B // tb)               # ceil; ragged last block handled by Pallas

    return pl.pallas_call(
        _linear_softmax_kernel,
        out_shape=jax.ShapeDtypeStruct((B, OUT_FEATURES), x.dtype),
        grid_spec=pltpu.PrefetchScalarGridSpec(
            num_scalar_prefetch=0,
            grid=(grid_b,),
            in_specs=[
                # x: tiled along batch, double-buffered by the Pallas pipeline.
                pl.BlockSpec((tb, IN_FEATURES), lambda i: (i, 0)),
                # w: same block every step -> stays resident in VMEM.
                pl.BlockSpec((IN_FEATURES, OUT_FEATURES), lambda i: (0, 0)),
            ],
            out_specs=pl.BlockSpec((tb, OUT_FEATURES), lambda i: (i, 0)),
        ),
        compiler_params=pltpu.CompilerParams(
            # Batch tiles are independent -> parallel (uses both v7x TCs).
            dimension_semantics=("parallel",),
            vmem_limit_bytes=VMEM_LIMIT_BYTES,
        ),
    )(x, w)


if __name__ == "__main__":
    key = jax.random.PRNGKey(0)
    k_x, k_w = jax.random.split(key)

    B = 8
    x = jax.random.normal(k_x, (B, IN_FEATURES), dtype=jnp.float32)

    # Deterministic init mimicking nn.Linear default:
    # uniform(-1/sqrt(in), 1/sqrt(in)) over [out, in], then transpose to [in, out].
    bound = 1.0 / jnp.sqrt(jnp.float32(IN_FEATURES))
    w_pt = jax.random.uniform(
        k_w, (OUT_FEATURES, IN_FEATURES), dtype=jnp.float32,
        minval=-bound, maxval=bound,
    )
    w = w_pt.T  # [300, 4]

    out = net_forward(x, w)
    jax.block_until_ready(out)

    # Correctness vs pure-JAX reference.
    ref = jax.nn.softmax(x @ w, axis=-1)
    row_sums = jnp.sum(out, axis=-1)
    assert out.shape == (B, OUT_FEATURES)
    assert jnp.allclose(row_sums, jnp.ones_like(row_sums), atol=1e-5)
    assert jnp.allclose(out, ref, atol=1e-3, rtol=1e-3)

    # B not a multiple of 8: single full-array block (no padding needed).
    B2 = 20
    x2 = jax.random.normal(jax.random.PRNGKey(1), (B2, IN_FEATURES), dtype=jnp.float32)
    out2 = net_forward(x2, w)
    jax.block_until_ready(out2)
    ref2 = jax.nn.softmax(x2 @ w, axis=-1)
    assert out2.shape == (B2, OUT_FEATURES)
    assert jnp.allclose(out2, ref2, atol=1e-3, rtol=1e-3)

    # Forced small tile -> ragged last block (exercises the cdiv/masked path).
    out3 = net_forward(x2, w, tile_b=8)
    jax.block_until_ready(out3)
    assert out3.shape == (B2, OUT_FEATURES)
    assert jnp.allclose(out3, ref2, atol=1e-3, rtol=1e-3)

    print("KERNEL_OK")
</pallas_src>

<mosaic_0001>
module attributes {stable_mosaic.version = 11 : i64} {
  func.func @_linear_softmax_kernel(%arg0: i32, %arg1: memref<8x300xf32, #tpu.memory_space<vmem>>, %arg2: memref<300x4xf32, #tpu.memory_space<vmem>>, %arg3: memref<8x4xf32, #tpu.memory_space<vmem>>) attributes {dimension_semantics = [#tpu.dimension_semantics<parallel>], iteration_bounds = array<i64: 1>, scalar_prefetch = 0 : i64, scratch_operands = 0 : i64, tpu.core_type = #tpu.core_type<tc>, window_params = [{transform_indices = @transform_0, window_bounds = array<i64: 8, 300>}, {pipeline_mode = #tpu.pipeline_mode<synchronous>, transform_indices = @transform_1, window_bounds = array<i64: 300, 4>}, {transform_indices = @transform_2, window_bounds = array<i64: 8, 4>}]} {
    %c0 = arith.constant 0 : index
    %c0_0 = arith.constant 0 : index
    %0 = vector.load %arg1[%c0, %c0_0] : memref<8x300xf32, #tpu.memory_space<vmem>>, vector<8x300xf32>
    %c0_1 = arith.constant 0 : index
    %c0_2 = arith.constant 0 : index
    %1 = vector.load %arg2[%c0_1, %c0_2] : memref<300x4xf32, #tpu.memory_space<vmem>>, vector<300x4xf32>
    %cst = arith.constant dense<0.000000e+00> : vector<8x4xf32>
    %2 = tpu.matmul %0, %1, %cst {dimension_numbers = #tpu.dot_dimension_numbers<[1], [0], [0], [1], [0, 0, 1, 1], [], []>} : vector<8x300xf32>, vector<300x4xf32>, vector<8x4xf32> -> vector<8x4xf32>
    %cst_3 = arith.constant dense<0xFF800000> : vector<8xf32>
    %3 = vector.multi_reduction <maximumf>, %2, %cst_3 [1] : vector<8x4xf32> to vector<8xf32>
    %4 = vector.shape_cast %3 : vector<8xf32> to vector<8x1xf32>
    %5 = vector.broadcast %4 : vector<8x1xf32> to vector<8x4xf32>
    %6 = arith.subf %2, %5 : vector<8x4xf32>
    %7 = math.exp %6 : vector<8x4xf32>
    %cst_4 = arith.constant dense<0.000000e+00> : vector<8xf32>
    %8 = vector.multi_reduction <add>, %7, %cst_4 [1] : vector<8x4xf32> to vector<8xf32>
    %9 = vector.shape_cast %8 : vector<8xf32> to vector<8x1xf32>
    %10 = vector.broadcast %9 : vector<8x1xf32> to vector<8x4xf32>
    %11 = arith.divf %7, %10 : vector<8x4xf32>
    %c0_5 = arith.constant 0 : index
    %c0_6 = arith.constant 0 : index
    %12 = vector.load %arg3[%c0_5, %c0_6] : memref<8x4xf32, #tpu.memory_space<vmem>>, vector<8x4xf32>
    tpu.vector_store %arg3[%c0_5, %c0_6], %11 {strides = array<i32>} : memref<8x4xf32, #tpu.memory_space<vmem>>, vector<8x4xf32>,
    return
  }
  func.func @transform_0(%arg0: i32) -> (i32, i32) {
    %c0_i32 = arith.constant 0 : i32
    %c0_i32_0 = arith.constant 0 : i32
    return %arg0, %c0_i32 : i32, i32
  }
  func.func @transform_1(%arg0: i32) -> (i32, i32) {
    %c0_i32 = arith.constant 0 : i32
    %c0_i32_0 = arith.constant 0 : i32
    %c0_i32_1 = arith.constant 0 : i32
    return %c0_i32, %c0_i32_0 : i32, i32
  }
  func.func @transform_2(%arg0: i32) -> (i32, i32) {
    %c0_i32 = arith.constant 0 : i32
    %c0_i32_0 = arith.constant 0 : i32
    return %arg0, %c0_i32 : i32, i32
  }
}

</mosaic_0001>

<bundles_post_ra>
// kernel: tpu_custom_call.1
= control target key start
LH: loop header
LB: loop body
LE: loop exit
PB: predicated region body
PF: predicated region fallthrough
CT: control target
= control target key end

     0   :  { %vm56_vm0 = vcmask 1043456   ;;  %vm52_vm1 = vcmask 359424   ;;  %vm120_vm2 = vcmask 31744   ;;  %s300_s1 = inlined_call_operand.vmem [shape: f32[300,4], index: 1, kind: input, shape index: {}]   ;;  %s301_s0 = inlined_call_operand.vmem [shape: f32[8,300], index: 0, kind: input, shape index: {}]   ;;  %s302_s2 = inlined_call_operand.vmem [shape: f32[8,4], index: 2, kind: output, shape index: {}]  }
   0x1   :  { %v29_v0 = vld [vmem:[%s300_s1 + $0x78] sm:$0xff]  ;;  %v28_v2 = vld [vmem:[%s300_s1 + $0x70] sm:$0xff]  ;;  %v27_v4 = vld [vmem:[%s300_s1 + $0x68] sm:$0xff] }
   0x2   :  { %v45_v1 = vld [vmem:[%s300_s1 + $0xf8] sm:$0xff]  ;;  %60 = vmatpush.msra.mxu0 %v29_v0  ;;  %v44_v3 = vld [vmem:[%s300_s1 + $0xf0] sm:$0xff]  ;;  %v43_v5 = vld [vmem:[%s300_s1 + $0xe8] sm:$0xff] }
   0x3   :  { %80 = vmatpush.msra.mxu1 %v45_v1  ;;  %v26_v6 = vld [vmem:[%s300_s1 + $0x60] sm:$0xff]  ;;  %v25_v8 = vld [vmem:[%s300_s1 + $0x58] sm:$0xff]  ;;  %v51_v10 = vld [vmem:[%s300_s1 + $0x128] sm:$0xf] }
   0x4   :  { %61 = vmatpush.msra.mxu0 %v28_v2  ;;  %v42_v7 = vld [vmem:[%s300_s1 + $0xe0] sm:$0xff]  ;;  %v41_v9 = vld [vmem:[%s300_s1 + $0xd8] sm:$0xff]  ;;  %v24_v12 = vld [vmem:[%s300_s1 + $0x50] sm:$0xff]  ;;  %150 = vmatpush.msk.msra.mxu2 %vm56_vm0, %v51_v10 }
   0x5   :  { %81 = vmatpush.msra.mxu1 %v44_v3  ;;  %v50_v11 = vld [vmem:[%s300_s1 + $0x120] sm:$0xff]  ;;  %v40_v13 = vld [vmem:[%s300_s1 + $0xd0] sm:$0xff]  ;;  %v49_v14 = vld [vmem:[%s300_s1 + $0x118] sm:$0xff] }
   0x6   :  { %62 = vmatpush.msra.mxu0 %v27_v4  ;;  %v23_v15 = vld [vmem:[%s300_s1 + $0x48] sm:$0xff]  ;;  %111 = vmatpush.msra.mxu2 %v50_v11  ;;  %v48_v17 = vld [vmem:[%s300_s1 + $0x110] sm:$0xff]  ;;  %v22_v18 = vld [vmem:[%s300_s1 + $0x40] sm:$0xff] }
   0x7   :  { %82 = vmatpush.msra.mxu1 %v43_v5  ;;  %v39_v16 = vld [vmem:[%s300_s1 + $0xc8] sm:$0xff]  ;;  %v38_v19 = vld [vmem:[%s300_s1 + $0xc0] sm:$0xff]  ;;  %v21_v21 = vld [vmem:[%s300_s1 + $0x38] sm:$0xff] }
   0x8   :  { %63 = vmatpush.msra.mxu0 %v26_v6  ;;  %112 = vmatpush.msra.mxu2 %v49_v14  ;;  %v47_v20 = vld [vmem:[%s300_s1 + $0x108] sm:$0xff]  ;;  %v37_v22 = vld [vmem:[%s300_s1 + $0xb8] sm:$0xff]  ;;  %v46_v23 = vld [vmem:[%s300_s1 + $0x100] sm:$0xff] }
   0x9   :  { %83 = vmatpush.msra.mxu1 %v42_v7  ;;  %v20_v24 = vld [vmem:[%s300_s1 + $0x30] sm:$0xff]  ;;  %v19_v27 = vld [vmem:[%s300_s1 + $0x28] sm:$0xff]  ;;  %v18_v29 = vld [vmem:[%s300_s1 + $0x20] sm:$0xff] }
   0xa   :  { %64 = vmatpush.msra.mxu0 %v25_v8  ;;  %113 = vmatpush.msra.mxu2 %v48_v17  ;;  %v36_v25 = vld [vmem:[%s300_s1 + $0xb0] sm:$0xff]  ;;  %v35_v28 = vld [vmem:[%s300_s1 + $0xa8] sm:$0xff]  ;;  %v34_v30 = vld [vmem:[%s300_s1 + $0xa0] sm:$0xff] }
   0xb   :  { %84 = vmatpush.msra.mxu1 %v41_v9  ;;  %v13_v26 = vld [vmem:[%s301_s0 + $0x10] sm:$0xff]  ;;  %v17_v31 = vld [vmem:[%s300_s1 + $0x18] sm:$0xff]  ;;  %v15_v35 = vld [vmem:[%s300_s1 + $0x8] sm:$0xff] }
   0xc   :  { %65 = vmatpush.msra.mxu0 %v24_v12  ;;  %114 = vmatpush.msra.mxu2 %v47_v20  ;;  %v33_v32 = vld [vmem:[%s300_s1 + $0x98] sm:$0xff]  ;;  %v16_v33 = vld [vmem:[%s300_s1 + $0x10] sm:$0xff]  ;;  %v31_v36 = vld [vmem:[%s300_s1 + $0x88] sm:$0xff] }
   0xd   :  { %85 = vmatpush.msra.mxu1 %v40_v13  ;;  %v32_v34 = vld [vmem:[%s300_s1 + $0x90] sm:$0xff]  ;;  %v14_v37 = vld [vmem:[%s300_s1] sm:$0xff]  ;;  %v12_v40 = vld [vmem:[%s301_s0 + $0x8] sm:$0xff] }
   0xe   :  { %66 = vmatpush.msra.mxu0 %v23_v15  ;;  %115 = vmatpush.msra.mxu2 %v46_v23  ;;  %v30_v38 = vld [vmem:[%s300_s1 + $0x80] sm:$0xff] }
   0xf   :  { %86 = vmatpush.msra.mxu1 %v39_v16  ;;  %151 = vmatmul.msk.f32.vlgmr.msra.gmra.mxu2 %vm52_vm1, %v13_v26  ;;  %v11_v39 = vld [vmem:[%s301_s0] sm:$0xff] }
  0x10   :  { %67 = vmatpush.msra.mxu0 %v22_v18 }
  0x11   :  { %87 = vmatpush.msra.mxu1 %v38_v19 }
  0x12   :  { %68 = vmatpush.msra.mxu0 %v21_v21 }
  0x13   :  { %88 = vmatpush.msra.mxu1 %v37_v22 }
  0x14   :  { %69 = vmatpush.msra.mxu0 %v20_v24 }
  0x15   :  { %89 = vmatpush.msra.mxu1 %v36_v25 }
  0x16   :  { %70 = vmatpush.msra.mxu0 %v19_v27 }
  0x17   :  { %90 = vmatpush.msra.mxu1 %v35_v28 }
  0x18   :  { %71 = vmatpush.msra.mxu0 %v18_v29 }
  0x19   :  { %91 = vmatpush.msra.mxu1 %v34_v30 }
  0x1a   :  { %72 = vmatpush.msra.mxu0 %v17_v31 }
  0x1b   :  { %92 = vmatpush.msra.mxu1 %v33_v32 }
  0x1c   :  { %73 = vmatpush.msra.mxu0 %v16_v33 }
  0x1d   :  { %93 = vmatpush.msra.mxu1 %v32_v34 }
  0x1e   :  { %74 = vmatpush.msra.mxu0 %v15_v35 }
  0x1f   :  { %94 = vmatpush.msra.mxu1 %v31_v36 }
  0x20   :  { %75 = vmatpush.msra.mxu0 %v14_v37 }
  0x21   :  { %95 = vmatpush.msra.mxu1 %v30_v38  ;;  %76 = vmatmul.f32.vlgmr.msra.gmra.mxu0 %v11_v39 }
  0x22   :  { %96 = vmatmul.f32.vlgmr.msra.gmra.mxu1 %v12_v40 }
  0x92   :  { %v117_v41 = vpop.f32.mrf.mxu2 }
  0x9e   :  { %v77_v42 = vpop.f32.mrf.mxu0 }
  0x9f   :  { %v97_v43 = vpop.f32.mrf.mxu1 }
  0xa0   :  { %v98_v44 = vadd.f32 %v97_v43, %v77_v42 }
  0xa2   :  { %v118_v45 = vadd.f32 %v117_v41, %v98_v44 }
  0xa4   :  { %v121_v46 = vsel %vm120_vm2, %v118_v45, -inf }
  0xa5   :  { %122 = vmax.xlane.f32.xlu0 %v121_v46 }
 0x118   :  { %v123_v47 = vpop.xlane.xlu0 %122 }
 0x119   :  { %v124_v48 = vsub.f32 %v118_v45, %v123_v47 }
 0x11b   :  { %v125_v49 = vmul.f32 1.442695, %v124_v48 }
 0x11d   :  { %152 = vpow2.f32 %v125_v49 }
 0x123   :  { %v153_v50 = vpop.eup %152 }
 0x124   :  { %v127_v51 = vsel %vm120_vm2, %v153_v50, 0.0 }
 0x125   :  { %128 = vadd.xlane.f32.xlu0 %v127_v51 }
 0x198   :  { %v129_v52 = vpop.xlane.xlu0 %128 }
 0x199   :  { %154 = vrcp.f32 %v129_v52  ;;  %v141_v56 = vand.u32 2147483648, %v129_v52  ;;  %v139_v58 = vand.u32 2147483647, %v129_v52  ;;  %vm135_vm4 = vweird.f32 %v129_v52 }
 0x19b   :  { %v142_v60 = vor.u32 1.1754944e-38, %v141_v56  ;;  %vm140_vm6 = vcmp.eq.f32.partialorder %v139_v58, 8.507059e+37 }
 0x19f   :  { %v155_v53 = vpop.eup %154 }
 0x1a0   :  { %v131_v54 = vmul.f32 %v155_v53, %v129_v52  ;;  %vm136_vm3 = vweird.f32 %v155_v53 }
 0x1a1   :  { %vm137_vm5 = vmor %vm135_vm4, %vm136_vm3 }
 0x1a2   :  { %v132_v55 = vsub.f32 1.0, %v131_v54 }
 0x1a4   :  { %v133_v57 = vmul.f32 %v155_v53, %v132_v55 }
 0x1a6   :  { %v134_v59 = vadd.f32 %v155_v53, %v133_v57 }
 0x1a8   :  { %v138_v61 = vsel %vm137_vm5, %v155_v53, %v134_v59 }
 0x1a9   :  { %v143_v62 = vsel %vm140_vm6, %v142_v60, %v138_v61 }
 0x1aa   :  { %v144_v63 = vmul.f32 %v153_v50, %v143_v62 }
 0x1ac   :  { %145 = vst.msk [vmem:[%s302_s2] sm:$0xff] %vm120_vm2, %v144_v63 }

</bundles_post_ra>
